<compile_context>
chip_gen: v7x
topology: tpu7x:2x2x1
jax: 0.10.0
libtpu: 0.0.40
codegen_flags: <defaults>
</compile_context>

<pallas_src>
import functools

import jax
import jax.numpy as jnp
from jax.experimental import pallas as pl
from jax.experimental.pallas import tpu as pltpu


def _round_up(x, m):
    return ((x + m - 1) // m) * m


# ----------------------------- Pallas kernels ------------------------------

def _fused_conv_kernel(x_ref, w_ref, b_ref, o_ref, *, k, s, Ws, L):
    """Fused patch-gather + conv matmul for one image.

    x_ref: [1, s*s, C_in, F]   bf16  polyphase-decimated, flattened input
    w_ref: [k*k, C_out, C_in]  bf16  weight taps (resident in VMEM)
    b_ref: [C_out, 1]          f32   bias
    o_ref: [1, C_out, L]       bf16  conv output (channel-major, with junk
                                     columns at u >= Wo that the glue drops)
    """
    acc = None
    for i in range(k):          # static unroll: k*k taps (9 toy / 81 real)
        for j in range(k):
            pq = (i % s) * s + (j % s)               # polyphase index
            off = (i // s) * Ws + (j // s)           # contiguous flat offset
            win = x_ref[0, pq, :, pl.ds(off, L)]     # [C_in, L] bf16
            part = jnp.dot(w_ref[i * k + j], win,
                           preferred_element_type=jnp.float32)  # [C_out, L]
            acc = part if acc is None else acc + part
    o_ref[0] = (acc + b_ref[...]).astype(o_ref.dtype)


def _squash_kernel(x_ref, g_ref, o_ref):
    """Lane-dense squash: each row holds (lanes // dim_caps) whole capsules.

    x_ref: [R, 128] bf16, g_ref: [128, 128] f32 block-diag ones, o_ref f32.
    """
    v = x_ref[...].astype(jnp.float32)
    # Per-capsule ||v||^2, broadcast back to each lane of its capsule, via one
    # MXU matmul against the block-diagonal 0/1 matrix (MXU otherwise idle).
    sq = jnp.dot(v * v, g_ref[...], preferred_element_type=jnp.float32)
    norm = jnp.sqrt(sq)
    # scale = ||v||^2 / (1+||v||^2) / (||v||+eps): one EUP reciprocal, no divs.
    scale = sq * pl.reciprocal((1.0 + sq) * (norm + 1e-8), approx=True)
    o_ref[...] = (scale * v).astype(o_ref.dtype)


# --------------------------- pallas_call wrappers ---------------------------

def fused_conv(x_flat, wk, bias2d, *, k, s, Ws, L_out):
    """x_flat: [B, s*s, C_in, F] bf16, wk: [k*k, C_out, C_in] bf16,
    bias2d: [C_out, 1] f32  ->  [B, C_out, L_out] bf16 (channel-major conv)."""
    B, ss, C_in, F = x_flat.shape
    C_out = wk.shape[1]
    kernel = functools.partial(_fused_conv_kernel, k=k, s=s, Ws=Ws, L=L_out)
    return pl.pallas_call(
        kernel,
        out_shape=jax.ShapeDtypeStruct((B, C_out, L_out), jnp.bfloat16),
        grid_spec=pltpu.PrefetchScalarGridSpec(
            num_scalar_prefetch=0,
            grid=(B,),                               # >=2 blocks -> v7x 2 TCs
            in_specs=[
                pl.BlockSpec((1, ss, C_in, F), lambda b: (b, 0, 0, 0)),
                # constant index_map -> weights DMA'd once, stay VMEM-resident
                pl.BlockSpec((k * k, C_out, C_in), lambda b: (0, 0, 0)),
                pl.BlockSpec((C_out, 1), lambda b: (0, 0)),
            ],
            out_specs=pl.BlockSpec((1, C_out, L_out), lambda b: (b, 0, 0)),
        ),
        compiler_params=pltpu.CompilerParams(
            dimension_semantics=("parallel",),
            # 48 MiB fits v7x's 64 MiB physical VMEM; holds the double-buffered
            # ~21 MB bf16 weight slab at real CapsNet sizes on every gen.
            vmem_limit_bytes=48 * 1024 * 1024,
        ),
    )(x_flat, wk, bias2d)
    # TODO(synk): at real sizes pack several images per grid step (concat
    # along the matmul N axis) to fill the 256-wide MXU; per-image N~60
    # under-utilizes it.  Also tile C_out if weights ever exceed VMEM.


def squash_pallas(caps_flat, dim_caps, *, lanes=128, row_tile=2048):
    """caps_flat: [T] bf16 capsule data in torch's flat order (T % dim_caps==0).
    Returns f32 [T] with squash applied per group of dim_caps elements."""
    assert lanes % dim_caps == 0
    total = caps_flat.shape[0]
    rows = -(-total // lanes)
    R = min(row_tile, _round_up(rows, 8))
    rows_p = _round_up(rows, R)
    x = jnp.pad(caps_flat, (0, rows_p * lanes - total)).reshape(rows_p, lanes)
    lane = jnp.arange(lanes)
    g = (lane[:, None] // dim_caps == lane[None, :] // dim_caps).astype(jnp.float32)

    out = pl.pallas_call(
        _squash_kernel,
        out_shape=jax.ShapeDtypeStruct((rows_p, lanes), jnp.float32),
        grid_spec=pltpu.PrefetchScalarGridSpec(
            num_scalar_prefetch=0,
            grid=(rows_p // R,),
            in_specs=[pl.BlockSpec((R, lanes), lambda i: (i, 0)),
                      pl.BlockSpec((lanes, lanes), lambda i: (0, 0))],
            out_specs=pl.BlockSpec((R, lanes), lambda i: (i, 0)),
        ),
        compiler_params=pltpu.CompilerParams(
            dimension_semantics=("parallel",),
            vmem_limit_bytes=48 * 1024 * 1024,
        ),
    )(x, g)
    return out.reshape(rows_p * lanes)[:total]


# ------------------------------- JAX glue ----------------------------------

def _phase_decompose(x, k, stride, padding):
    """Stride-s polyphase split of the (small) input, emitted in bf16.

    Returns flat [B, s*s, C, F] bf16 where each (i,j) conv tap is a contiguous
    length-L window at static offset (i//s)*Ws + (j//s) of phase (i%s, j%s)."""
    B, C, H, W = x.shape
    s = stride
    Hc, Wc = H + 2 * padding, W + 2 * padding
    Ho, Wo = (Hc - k) // s + 1, (Wc - k) // s + 1
    dmax = (k - 1) // s
    Hs, Ws = Ho + dmax, Wo + dmax
    Ht, Wt = s * Hs, s * Ws
    xp = jnp.pad(x, ((0, 0), (0, 0),
                     (padding, max(0, Ht - H - padding)),
                     (padding, max(0, Wt - W - padding))),
                 ).astype(jnp.bfloat16)[:, :, :Ht, :Wt]
    ph = xp.reshape(B, C, Hs, s, Ws, s).transpose(0, 3, 5, 1, 2, 4)  # [B,s,s,C,Hs,Ws]
    flat = ph.reshape(B, s * s, C, Hs * Ws)
    F = Hs * Ws + dmax                       # room for the largest tap offset
    flat = jnp.pad(flat, ((0, 0), (0, 0), (0, 0), (0, F - Hs * Ws)))
    return flat, Ho, Wo, Ws, F


@functools.partial(jax.jit, static_argnames=("dim_caps", "stride", "padding"))
def primary_caps_forward(x, weight, bias, dim_caps, stride=1, padding=0):
    """x: [B, C_in, H, W] (NCHW), weight: [C_out, C_in, k, k], bias: [C_out].
    Returns [B, num_caps, dim_caps] with squash applied along dim_caps."""
    B, C_in, H, W = x.shape
    C_out, _, k, _ = weight.shape

    x_flat, Ho, Wo, Ws, F = _phase_decompose(x, k, stride, padding)
    wk = weight.transpose(2, 3, 0, 1).reshape(k * k, C_out, C_in).astype(jnp.bfloat16)
    b2 = bias.reshape(C_out, 1).astype(jnp.float32)
    L_out = Ho * Ws

    conv = fused_conv(x_flat, wk, b2, k=k, s=stride, Ws=Ws, L_out=L_out)

    # Channel-major per-image output row-major-flattens into torch's NCHW
    # capsule order, so no transpose is needed — just drop the junk columns of
    # the polyphase trick and pad to a lane-dense slab (tiny fused XLA pass).
    S = Ho * Wo
    assert (C_out * S) % dim_caps == 0 and 128 % dim_caps == 0
    caps_flat = (conv.reshape(B, C_out, Ho, Ws)[:, :, :, :Wo]
                     .reshape(B * C_out * S))                    # bf16, flat

    squashed = squash_pallas(caps_flat, dim_caps)                # f32, flat
    num_caps = (C_out * S) // dim_caps
    return squashed.reshape(B, num_caps, dim_caps)


# ------------------------------ reference ----------------------------------

def primary_caps_reference(x, weight, bias, dim_caps, stride=1, padding=0):
    out = jax.lax.conv_general_dilated(
        x, weight, window_strides=(stride, stride),
        padding=[(padding, padding), (padding, padding)],
        dimension_numbers=("NCHW", "OIHW", "NCHW"))
    out = out + bias.reshape(1, -1, 1, 1)
    out = out.reshape(x.shape[0], -1, dim_caps)
    sq = jnp.sum(out * out, axis=-1, keepdims=True)
    norm = jnp.sqrt(sq)
    scale = sq / (1.0 + sq) / (norm + 1e-8)
    return scale * out


# --------------------------------- main -------------------------------------

if __name__ == "__main__":
    # Small shapes consistent with the module:
    # in_channels=4, out_channels=32, dim_caps=8, kernel_size=3, stride=2, padding=0
    B, C_in, H, W = 2, 4, 16, 16
    C_out, dim_caps, ksize, stride, padding = 32, 8, 3, 2, 0

    key = jax.random.PRNGKey(0)
    kx, kw, kb = jax.random.split(key, 3)
    x = jax.random.normal(kx, (B, C_in, H, W), dtype=jnp.float32)
    fan_in = C_in * ksize * ksize
    bound = 1.0 / (fan_in ** 0.5)
    weight = jax.random.uniform(kw, (C_out, C_in, ksize, ksize),
                                minval=-bound, maxval=bound, dtype=jnp.float32)
    bias = jax.random.uniform(kb, (C_out,), minval=-bound, maxval=bound,
                              dtype=jnp.float32)

    out = primary_caps_forward(x, weight, bias, dim_caps, stride, padding)
    out = jax.block_until_ready(out)

    ref = primary_caps_reference(x, weight, bias, dim_caps, stride, padding)
    ref = jax.block_until_ready(ref)

    assert out.shape == ref.shape, (out.shape, ref.shape)
    # bf16 MXU inputs / bf16 activations + approx reciprocal -> small gap vs f32.
    assert jnp.allclose(out, ref, rtol=5e-2, atol=5e-2), \
        float(jnp.max(jnp.abs(out - ref)))

    print("KERNEL_OK")
</pallas_src>

<mosaic_0001>
module attributes {stable_mosaic.version = 11 : i64} {
  func.func @_fused_conv_kernel(%arg0: i32, %arg1: memref<1x4x4x65xbf16, #tpu.memory_space<vmem>>, %arg2: memref<9x32x4xbf16, #tpu.memory_space<vmem>>, %arg3: memref<32x1xf32, #tpu.memory_space<vmem>>, %arg4: memref<1x32x56xbf16, #tpu.memory_space<vmem>>) attributes {dimension_semantics = [#tpu.dimension_semantics<parallel>], iteration_bounds = array<i64: 2>, scalar_prefetch = 0 : i64, scratch_operands = 0 : i64, tpu.core_type = #tpu.core_type<tc>, window_params = [{transform_indices = @transform_0, window_bounds = array<i64: 1, 4, 4, 65>}, {pipeline_mode = #tpu.pipeline_mode<synchronous>, transform_indices = @transform_1, window_bounds = array<i64: 9, 32, 4>}, {pipeline_mode = #tpu.pipeline_mode<synchronous>, transform_indices = @transform_2, window_bounds = array<i64: 32, 1>}, {transform_indices = @transform_3, window_bounds = array<i64: 1, 32, 56>}]} {
    %c0 = arith.constant 0 : index
    %c0_0 = arith.constant 0 : index
    %c0_1 = arith.constant 0 : index
    %c0_2 = arith.constant 0 : index
    %0 = vector.load %arg1[%c0, %c0_0, %c0_1, %c0_2] : memref<1x4x4x65xbf16, #tpu.memory_space<vmem>>, vector<1x1x4x56xbf16>
    %1 = vector.shape_cast %0 : vector<1x1x4x56xbf16> to vector<4x56xbf16>
    %c0_3 = arith.constant 0 : index
    %c0_4 = arith.constant 0 : index
    %c0_5 = arith.constant 0 : index
    %2 = vector.load %arg2[%c0_3, %c0_4, %c0_5] : memref<9x32x4xbf16, #tpu.memory_space<vmem>>, vector<1x32x4xbf16>
    %3 = vector.shape_cast %2 : vector<1x32x4xbf16> to vector<32x4xbf16>
    %cst = arith.constant dense<0.000000e+00> : vector<32x56xf32>
    %4 = tpu.matmul %3, %1, %cst {dimension_numbers = #tpu.dot_dimension_numbers<[1], [0], [0], [1], [0, 0, 1, 1], [], []>} : vector<32x4xbf16>, vector<4x56xbf16>, vector<32x56xf32> -> vector<32x56xf32>
    %c0_6 = arith.constant 0 : index
    %c1 = arith.constant 1 : index
    %c0_7 = arith.constant 0 : index
    %c0_8 = arith.constant 0 : index
    %5 = vector.load %arg1[%c0_6, %c1, %c0_7, %c0_8] : memref<1x4x4x65xbf16, #tpu.memory_space<vmem>>, vector<1x1x4x56xbf16>
    %6 = vector.shape_cast %5 : vector<1x1x4x56xbf16> to vector<4x56xbf16>
    %c1_9 = arith.constant 1 : index
    %c0_10 = arith.constant 0 : index
    %c0_11 = arith.constant 0 : index
    %7 = vector.load %arg2[%c1_9, %c0_10, %c0_11] : memref<9x32x4xbf16, #tpu.memory_space<vmem>>, vector<1x32x4xbf16>
    %8 = vector.shape_cast %7 : vector<1x32x4xbf16> to vector<32x4xbf16>
    %cst_12 = arith.constant dense<0.000000e+00> : vector<32x56xf32>
    %9 = tpu.matmul %8, %6, %cst_12 {dimension_numbers = #tpu.dot_dimension_numbers<[1], [0], [0], [1], [0, 0, 1, 1], [], []>} : vector<32x4xbf16>, vector<4x56xbf16>, vector<32x56xf32> -> vector<32x56xf32>
    %10 = arith.addf %4, %9 : vector<32x56xf32>
    %c0_13 = arith.constant 0 : index
    %c0_14 = arith.constant 0 : index
    %c0_15 = arith.constant 0 : index
    %c1_16 = arith.constant 1 : index
    %11 = vector.load %arg1[%c0_13, %c0_14, %c0_15, %c1_16] : memref<1x4x4x65xbf16, #tpu.memory_space<vmem>>, vector<1x1x4x56xbf16>
    %12 = vector.shape_cast %11 : vector<1x1x4x56xbf16> to vector<4x56xbf16>
    %c2 = arith.constant 2 : index
    %c0_17 = arith.constant 0 : index
    %c0_18 = arith.constant 0 : index
    %13 = vector.load %arg2[%c2, %c0_17, %c0_18] : memref<9x32x4xbf16, #tpu.memory_space<vmem>>, vector<1x32x4xbf16>
    %14 = vector.shape_cast %13 : vector<1x32x4xbf16> to vector<32x4xbf16>
    %cst_19 = arith.constant dense<0.000000e+00> : vector<32x56xf32>
    %15 = tpu.matmul %14, %12, %cst_19 {dimension_numbers = #tpu.dot_dimension_numbers<[1], [0], [0], [1], [0, 0, 1, 1], [], []>} : vector<32x4xbf16>, vector<4x56xbf16>, vector<32x56xf32> -> vector<32x56xf32>
    %16 = arith.addf %10, %15 : vector<32x56xf32>
    %c0_20 = arith.constant 0 : index
    %c2_21 = arith.constant 2 : index
    %c0_22 = arith.constant 0 : index
    %c0_23 = arith.constant 0 : index
    %17 = vector.load %arg1[%c0_20, %c2_21, %c0_22, %c0_23] : memref<1x4x4x65xbf16, #tpu.memory_space<vmem>>, vector<1x1x4x56xbf16>
    %18 = vector.shape_cast %17 : vector<1x1x4x56xbf16> to vector<4x56xbf16>
    %c3 = arith.constant 3 : index
    %c0_24 = arith.constant 0 : index
    %c0_25 = arith.constant 0 : index
    %19 = vector.load %arg2[%c3, %c0_24, %c0_25] : memref<9x32x4xbf16, #tpu.memory_space<vmem>>, vector<1x32x4xbf16>
    %20 = vector.shape_cast %19 : vector<1x32x4xbf16> to vector<32x4xbf16>
    %cst_26 = arith.constant dense<0.000000e+00> : vector<32x56xf32>
    %21 = tpu.matmul %20, %18, %cst_26 {dimension_numbers = #tpu.dot_dimension_numbers<[1], [0], [0], [1], [0, 0, 1, 1], [], []>} : vector<32x4xbf16>, vector<4x56xbf16>, vector<32x56xf32> -> vector<32x56xf32>
    %22 = arith.addf %16, %21 : vector<32x56xf32>
    %c0_27 = arith.constant 0 : index
    %c3_28 = arith.constant 3 : index
    %c0_29 = arith.constant 0 : index
    %c0_30 = arith.constant 0 : index
    %23 = vector.load %arg1[%c0_27, %c3_28, %c0_29, %c0_30] : memref<1x4x4x65xbf16, #tpu.memory_space<vmem>>, vector<1x1x4x56xbf16>
    %24 = vector.shape_cast %23 : vector<1x1x4x56xbf16> to vector<4x56xbf16>
    %c4 = arith.constant 4 : index
    %c0_31 = arith.constant 0 : index
    %c0_32 = arith.constant 0 : index
    %25 = vector.load %arg2[%c4, %c0_31, %c0_32] : memref<9x32x4xbf16, #tpu.memory_space<vmem>>, vector<1x32x4xbf16>
    %26 = vector.shape_cast %25 : vector<1x32x4xbf16> to vector<32x4xbf16>
    %cst_33 = arith.constant dense<0.000000e+00> : vector<32x56xf32>
    %27 = tpu.matmul %26, %24, %cst_33 {dimension_numbers = #tpu.dot_dimension_numbers<[1], [0], [0], [1], [0, 0, 1, 1], [], []>} : vector<32x4xbf16>, vector<4x56xbf16>, vector<32x56xf32> -> vector<32x56xf32>
    %28 = arith.addf %22, %27 : vector<32x56xf32>
    %c0_34 = arith.constant 0 : index
    %c2_35 = arith.constant 2 : index
    %c0_36 = arith.constant 0 : index
    %c1_37 = arith.constant 1 : index
    %29 = vector.load %arg1[%c0_34, %c2_35, %c0_36, %c1_37] : memref<1x4x4x65xbf16, #tpu.memory_space<vmem>>, vector<1x1x4x56xbf16>
    %30 = vector.shape_cast %29 : vector<1x1x4x56xbf16> to vector<4x56xbf16>
    %c5 = arith.constant 5 : index
    %c0_38 = arith.constant 0 : index
    %c0_39 = arith.constant 0 : index
    %31 = vector.load %arg2[%c5, %c0_38, %c0_39] : memref<9x32x4xbf16, #tpu.memory_space<vmem>>, vector<1x32x4xbf16>
    %32 = vector.shape_cast %31 : vector<1x32x4xbf16> to vector<32x4xbf16>
    %cst_40 = arith.constant dense<0.000000e+00> : vector<32x56xf32>
    %33 = tpu.matmul %32, %30, %cst_40 {dimension_numbers = #tpu.dot_dimension_numbers<[1], [0], [0], [1], [0, 0, 1, 1], [], []>} : vector<32x4xbf16>, vector<4x56xbf16>, vector<32x56xf32> -> vector<32x56xf32>
    %34 = arith.addf %28, %33 : vector<32x56xf32>
    %c0_41 = arith.constant 0 : index
    %c0_42 = arith.constant 0 : index
    %c0_43 = arith.constant 0 : index
    %c8 = arith.constant 8 : index
    %35 = vector.load %arg1[%c0_41, %c0_42, %c0_43, %c8] : memref<1x4x4x65xbf16, #tpu.memory_space<vmem>>, vector<1x1x4x56xbf16>
    %36 = vector.shape_cast %35 : vector<1x1x4x56xbf16> to vector<4x56xbf16>
    %c6 = arith.constant 6 : index
    %c0_44 = arith.constant 0 : index
    %c0_45 = arith.constant 0 : index
    %37 = vector.load %arg2[%c6, %c0_44, %c0_45] : memref<9x32x4xbf16, #tpu.memory_space<vmem>>, vector<1x32x4xbf16>
    %38 = vector.shape_cast %37 : vector<1x32x4xbf16> to vector<32x4xbf16>
    %cst_46 = arith.constant dense<0.000000e+00> : vector<32x56xf32>
    %39 = tpu.matmul %38, %36, %cst_46 {dimension_numbers = #tpu.dot_dimension_numbers<[1], [0], [0], [1], [0, 0, 1, 1], [], []>} : vector<32x4xbf16>, vector<4x56xbf16>, vector<32x56xf32> -> vector<32x56xf32>
    %40 = arith.addf %34, %39 : vector<32x56xf32>
    %c0_47 = arith.constant 0 : index
    %c1_48 = arith.constant 1 : index
    %c0_49 = arith.constant 0 : index
    %c8_50 = arith.constant 8 : index
    %41 = vector.load %arg1[%c0_47, %c1_48, %c0_49, %c8_50] : memref<1x4x4x65xbf16, #tpu.memory_space<vmem>>, vector<1x1x4x56xbf16>
    %42 = vector.shape_cast %41 : vector<1x1x4x56xbf16> to vector<4x56xbf16>
    %c7 = arith.constant 7 : index
    %c0_51 = arith.constant 0 : index
    %c0_52 = arith.constant 0 : index
    %43 = vector.load %arg2[%c7, %c0_51, %c0_52] : memref<9x32x4xbf16, #tpu.memory_space<vmem>>, vector<1x32x4xbf16>
    %44 = vector.shape_cast %43 : vector<1x32x4xbf16> to vector<32x4xbf16>
    %cst_53 = arith.constant dense<0.000000e+00> : vector<32x56xf32>
    %45 = tpu.matmul %44, %42, %cst_53 {dimension_numbers = #tpu.dot_dimension_numbers<[1], [0], [0], [1], [0, 0, 1, 1], [], []>} : vector<32x4xbf16>, vector<4x56xbf16>, vector<32x56xf32> -> vector<32x56xf32>
    %46 = arith.addf %40, %45 : vector<32x56xf32>
    %c0_54 = arith.constant 0 : index
    %c0_55 = arith.constant 0 : index
    %c0_56 = arith.constant 0 : index
    %c9 = arith.constant 9 : index
    %47 = vector.load %arg1[%c0_54, %c0_55, %c0_56, %c9] : memref<1x4x4x65xbf16, #tpu.memory_space<vmem>>, vector<1x1x4x56xbf16>
    %48 = vector.shape_cast %47 : vector<1x1x4x56xbf16> to vector<4x56xbf16>
    %c8_57 = arith.constant 8 : index
    %c0_58 = arith.constant 0 : index
    %c0_59 = arith.constant 0 : index
    %49 = vector.load %arg2[%c8_57, %c0_58, %c0_59] : memref<9x32x4xbf16, #tpu.memory_space<vmem>>, vector<1x32x4xbf16>
    %50 = vector.shape_cast %49 : vector<1x32x4xbf16> to vector<32x4xbf16>
    %cst_60 = arith.constant dense<0.000000e+00> : vector<32x56xf32>
    %51 = tpu.matmul %50, %48, %cst_60 {dimension_numbers = #tpu.dot_dimension_numbers<[1], [0], [0], [1], [0, 0, 1, 1], [], []>} : vector<32x4xbf16>, vector<4x56xbf16>, vector<32x56xf32> -> vector<32x56xf32>
    %52 = arith.addf %46, %51 : vector<32x56xf32>
    %c0_61 = arith.constant 0 : index
    %c0_62 = arith.constant 0 : index
    %53 = vector.load %arg3[%c0_61, %c0_62] : memref<32x1xf32, #tpu.memory_space<vmem>>, vector<32x1xf32>
    %54 = vector.broadcast %53 : vector<32x1xf32> to vector<32x56xf32>
    %55 = arith.addf %52, %54 : vector<32x56xf32>
    %56 = arith.truncf %55 : vector<32x56xf32> to vector<32x56xbf16>
    %c0_63 = arith.constant 0 : index
    %c0_64 = arith.constant 0 : index
    %c0_65 = arith.constant 0 : index
    %57 = vector.load %arg4[%c0_63, %c0_64, %c0_65] : memref<1x32x56xbf16, #tpu.memory_space<vmem>>, vector<1x32x56xbf16>
    %58 = vector.shape_cast %57 : vector<1x32x56xbf16> to vector<32x56xbf16>
    %59 = vector.shape_cast %56 : vector<32x56xbf16> to vector<1x32x56xbf16>
    tpu.vector_store %arg4[%c0_63, %c0_64, %c0_65], %59 {strides = array<i32>} : memref<1x32x56xbf16, #tpu.memory_space<vmem>>, vector<1x32x56xbf16>,
    return
  }
  func.func @transform_0(%arg0: i32) -> (i32, i32, i32, i32) {
    %c0_i32 = arith.constant 0 : i32
    %c0_i32_0 = arith.constant 0 : i32
    %c0_i32_1 = arith.constant 0 : i32
    %c0_i32_2 = arith.constant 0 : i32
    return %arg0, %c0_i32, %c0_i32_0, %c0_i32_1 : i32, i32, i32, i32
  }
  func.func @transform_1(%arg0: i32) -> (i32, i32, i32) {
    %c0_i32 = arith.constant 0 : i32
    %c0_i32_0 = arith.constant 0 : i32
    %c0_i32_1 = arith.constant 0 : i32
    %c0_i32_2 = arith.constant 0 : i32
    return %c0_i32, %c0_i32_0, %c0_i32_1 : i32, i32, i32
  }
  func.func @transform_2(%arg0: i32) -> (i32, i32) {
    %c0_i32 = arith.constant 0 : i32
    %c0_i32_0 = arith.constant 0 : i32
    %c0_i32_1 = arith.constant 0 : i32
    return %c0_i32, %c0_i32_0 : i32, i32
  }
  func.func @transform_3(%arg0: i32) -> (i32, i32, i32) {
    %c0_i32 = arith.constant 0 : i32
    %c0_i32_0 = arith.constant 0 : i32
    %c0_i32_1 = arith.constant 0 : i32
    return %arg0, %c0_i32, %c0_i32_0 : i32, i32, i32
  }
}

module attributes {stable_mosaic.version = 11 : i64} {
  func.func @_squash_kernel(%arg0: i32, %arg1: memref<32x128xbf16, #tpu.memory_space<vmem>>, %arg2: memref<128x128xf32, #tpu.memory_space<vmem>>, %arg3: memref<32x128xf32, #tpu.memory_space<vmem>>) attributes {dimension_semantics = [#tpu.dimension_semantics<parallel>], iteration_bounds = array<i64: 1>, scalar_prefetch = 0 : i64, scratch_operands = 0 : i64, tpu.core_type = #tpu.core_type<tc>, window_params = [{transform_indices = @transform_0, window_bounds = array<i64: 32, 128>}, {pipeline_mode = #tpu.pipeline_mode<synchronous>, transform_indices = @transform_1, window_bounds = array<i64: 128, 128>}, {transform_indices = @transform_2, window_bounds = array<i64: 32, 128>}]} {
    %c0 = arith.constant 0 : index
    %c0_0 = arith.constant 0 : index
    %0 = vector.load %arg1[%c0, %c0_0] : memref<32x128xbf16, #tpu.memory_space<vmem>>, vector<32x128xbf16>
    %1 = arith.extf %0 : vector<32x128xbf16> to vector<32x128xf32>
    %2 = arith.mulf %1, %1 : vector<32x128xf32>
    %c0_1 = arith.constant 0 : index
    %c0_2 = arith.constant 0 : index
    %3 = vector.load %arg2[%c0_1, %c0_2] : memref<128x128xf32, #tpu.memory_space<vmem>>, vector<128x128xf32>
    %cst = arith.constant dense<0.000000e+00> : vector<32x128xf32>
    %4 = tpu.matmul %2, %3, %cst {dimension_numbers = #tpu.dot_dimension_numbers<[1], [0], [0], [1], [0, 0, 1, 1], [], []>} : vector<32x128xf32>, vector<128x128xf32>, vector<32x128xf32> -> vector<32x128xf32>
    %5 = math.sqrt %4 : vector<32x128xf32>
    %cst_3 = arith.constant 1.000000e+00 : f32
    %6 = vector.broadcast %cst_3 : f32 to vector<32x128xf32>
    %7 = arith.addf %6, %4 : vector<32x128xf32>
    %cst_4 = arith.constant 9.99999993E-9 : f32
    %8 = vector.broadcast %cst_4 : f32 to vector<32x128xf32>
    %9 = arith.addf %5, %8 : vector<32x128xf32>
    %10 = arith.mulf %7, %9 : vector<32x128xf32>
    %11 = tpu.reciprocal %10 {approx = true} : vector<32x128xf32> -> vector<32x128xf32>
    %12 = arith.mulf %4, %11 : vector<32x128xf32>
    %13 = arith.mulf %12, %1 : vector<32x128xf32>
    %c0_5 = arith.constant 0 : index
    %c0_6 = arith.constant 0 : index
    %14 = vector.load %arg3[%c0_5, %c0_6] : memref<32x128xf32, #tpu.memory_space<vmem>>, vector<32x128xf32>
    tpu.vector_store %arg3[%c0_5, %c0_6], %13 {strides = array<i32>} : memref<32x128xf32, #tpu.memory_space<vmem>>, vector<32x128xf32>,
    return
  }
  func.func @transform_0(%arg0: i32) -> (i32, i32) {
    %c0_i32 = arith.constant 0 : i32
    %c0_i32_0 = arith.constant 0 : i32
    return %arg0, %c0_i32 : i32, i32
  }
  func.func @transform_1(%arg0: i32) -> (i32, i32) {
    %c0_i32 = arith.constant 0 : i32
    %c0_i32_0 = arith.constant 0 : i32
    %c0_i32_1 = arith.constant 0 : i32
    return %c0_i32, %c0_i32_0 : i32, i32
  }
  func.func @transform_2(%arg0: i32) -> (i32, i32) {
    %c0_i32 = arith.constant 0 : i32
    %c0_i32_0 = arith.constant 0 : i32
    return %arg0, %c0_i32 : i32, i32
  }
}

</mosaic_0001>

<bundles_post_ra>
// kernel: primary_caps_forward.3
= control target key start
LH: loop header
LB: loop body
LE: loop exit
PB: predicated region body
PF: predicated region fallthrough
CT: control target
= control target key end

     0   :  { %s418_s1 = inlined_call_operand.vmem [shape: f32[128,128], index: 1, kind: input, shape index: {}]   ;;  %s419_s0 = inlined_call_operand.vmem [shape: bf16[32,128], index: 0, kind: input, shape index: {}]   ;;  %s420_s2 = inlined_call_operand.vmem [shape: f32[32,128], index: 2, kind: output, shape index: {}]  }
   0x1   :  { %v23_v0 = vld [vmem:[%s418_s1] sm:$0xff]  ;;  %v24_v1 = vld [vmem:[%s418_s1 + $0x8] sm:$0xff]  ;;  %v25_v2 = vld [vmem:[%s418_s1 + $0x10] sm:$0xff] }
   0x2   :  { %v251_v3 = vpack.c.bf16 %v24_v1, %v23_v0  ;;  %v26_v4 = vld [vmem:[%s418_s1 + $0x18] sm:$0xff]  ;;  %v27_v6 = vld [vmem:[%s418_s1 + $0x20] sm:$0xff]  ;;  %v28_v7 = vld [vmem:[%s418_s1 + $0x28] sm:$0xff] }
   0x3   :  { %v255_v5 = vpack.c.bf16 %v26_v4, %v25_v2  ;;  %v259_v8 = vpack.c.bf16 %v28_v7, %v27_v6  ;;  %v185_v9 = vld [vmem:[%s419_s0] sm:$0xff]   ;;  %v192_v10 = vld [vmem:[%s419_s0 + $0x8] sm:$0xff]   ;;  %v29_v11 = vld [vmem:[%s418_s1 + $0x30] sm:$0xff] }
   0x4   :  { %252 = vmatprep.subr.bf16.mxu0 %v251_v3  ;;  %283 = vmatprep.subr.bf16.mxu1 %v251_v3  ;;  %v30_v12 = vld [vmem:[%s418_s1 + $0x38] sm:$0xff]  ;;  %v360_v13 = vunpack.c.l.bf16 %v185_v9  ;;  %v362_v14 = vunpack.c.l.bf16 %v192_v10  ;;  %v31_v18 = vld [vmem:[%s418_s1 + $0x40] sm:$0xff]  ;;  %v32_v19 = vld [vmem:[%s418_s1 + $0x48] sm:$0xff]  ;;  %v392_v30 = vunpack.c.h.bf16 %v185_v9  ;;  %v394_v31 = vunpack.c.h.bf16 %v192_v10 }
   0x5   :  { %254 = vmatpush3.bf16.msra.mxu0 %v251_v3  ;;  %291 = vmatpush3.bf16.msra.mxu1 %v251_v3  ;;  %v263_v17 = vpack.c.bf16 %v30_v12, %v29_v11  ;;  %v267_v20 = vpack.c.bf16 %v32_v19, %v31_v18  ;;  %v33_v21 = vld [vmem:[%s418_s1 + $0x50] sm:$0xff]  ;;  %v34_v22 = vld [vmem:[%s418_s1 + $0x58] sm:$0xff]  ;;  %v35_v24 = vld [vmem:[%s418_s1 + $0x60] sm:$0xff] }
   0x6   :  { %256 = vmatprep.subr.bf16.mxu0 %v255_v5  ;;  %284 = vmatprep.subr.bf16.mxu1 %v255_v5  ;;  %v19_v15 = vmul.f32 %v360_v13, %v360_v13  ;;  %v21_v16 = vmul.f32 %v362_v14, %v362_v14  ;;  %v271_v23 = vpack.c.bf16 %v34_v22, %v33_v21  ;;  %v36_v25 = vld [vmem:[%s418_s1 + $0x68] sm:$0xff]  ;;  %v37_v27 = vld [vmem:[%s418_s1 + $0x70] sm:$0xff]  ;;  %v38_v28 = vld [vmem:[%s418_s1 + $0x78] sm:$0xff] }
   0x7   :  { %v275_v26 = vpack.c.bf16 %v36_v25, %v35_v24  ;;  %v279_v29 = vpack.c.bf16 %v38_v28, %v37_v27  ;;  %v20_v32 = vmul.f32 %v392_v30, %v392_v30  ;;  %v22_v33 = vmul.f32 %v394_v31, %v394_v31 }
   0x8   :  { %245 = vmatprep.mubr.f32.mxu0 %v19_v15  ;;  %248 = vmatprep.mubr.f32.mxu1 %v21_v16 }
   0x9   :  { %258 = vmatpush3.bf16.msra.mxu0 %v255_v5  ;;  %292 = vmatpush3.bf16.msra.mxu1 %v255_v5 }
   0xa   :  { %260 = vmatprep.subr.bf16.mxu0 %v259_v8  ;;  %285 = vmatprep.subr.bf16.mxu1 %v259_v8 }
   0xd   :  { %262 = vmatpush3.bf16.msra.mxu0 %v259_v8  ;;  %293 = vmatpush3.bf16.msra.mxu1 %v259_v8 }
   0xe   :  { %264 = vmatprep.subr.bf16.mxu0 %v263_v17  ;;  %286 = vmatprep.subr.bf16.mxu1 %v263_v17 }
  0x11   :  { %266 = vmatpush3.bf16.msra.mxu0 %v263_v17  ;;  %294 = vmatpush3.bf16.msra.mxu1 %v263_v17 }
  0x12   :  { %268 = vmatprep.subr.bf16.mxu0 %v267_v20  ;;  %287 = vmatprep.subr.bf16.mxu1 %v267_v20 }
  0x15   :  { %270 = vmatpush3.bf16.msra.mxu0 %v267_v20  ;;  %295 = vmatpush3.bf16.msra.mxu1 %v267_v20 }
  0x16   :  { %272 = vmatprep.subr.bf16.mxu0 %v271_v23  ;;  %288 = vmatprep.subr.bf16.mxu1 %v271_v23 }
  0x19   :  { %274 = vmatpush3.bf16.msra.mxu0 %v271_v23  ;;  %296 = vmatpush3.bf16.msra.mxu1 %v271_v23 }
  0x1a   :  { %276 = vmatprep.subr.bf16.mxu0 %v275_v26  ;;  %289 = vmatprep.subr.bf16.mxu1 %v275_v26 }
  0x1d   :  { %278 = vmatpush3.bf16.msra.mxu0 %v275_v26  ;;  %297 = vmatpush3.bf16.msra.mxu1 %v275_v26 }
  0x1e   :  { %280 = vmatprep.subr.bf16.mxu0 %v279_v29  ;;  %290 = vmatprep.subr.bf16.mxu1 %v279_v29 }
  0x21   :  { %282 = vmatpush3.bf16.msra.mxu0 %v279_v29  ;;  %298 = vmatpush3.bf16.msra.mxu1 %v279_v29 }
  0x24   :  { %246 = vmatmul.mubr.f32.vlgmr.msra.gmra.mrb[0].mxu0 %v20_v32  ;;  %249 = vmatmul.mubr.f32.vlgmr.msra.gmra.mrb[0].mxu1 %v22_v33 }
  0xf7   :  { %v247_v34 = vpop.f32.mrb[0].mxu0  ;;  %v250_v35 = vpop.f32.mrb[0].mxu1 }
  0xf8   :  { %299 = vrsqrt.f32 %v247_v34  ;;  %v105_v36 = vpop.f32.mrb[1].mxu0  ;;  %v115_v37 = vpop.f32.mrb[1].mxu1  ;;  %vm133_vm0 = vcmp.eq.f32.partialorder %v247_v34, inf  ;;  %vm135_vm1 = vcmp.eq.f32.partialorder %v247_v34, 0.0  ;;  %v136_v39 = vand.u32 2147483648, %v247_v34 }
  0xf9   :  { %301 = vrsqrt.f32 %v250_v35  ;;  %v153_v42 = vadd.f32 1.0, %v247_v34  ;;  %vm147_vm2 = vcmp.eq.f32.partialorder %v250_v35, inf  ;;  %vm149_vm3 = vcmp.eq.f32.partialorder %v250_v35, 0.0 }
  0xfa   :  { %303 = vrsqrt.f32 %v105_v36  ;;  %v150_v45 = vand.u32 2147483648, %v250_v35  ;;  %v155_v46 = vadd.f32 1.0, %v250_v35  ;;  %vm126_vm4 = vcmp.eq.f32.partialorder %v105_v36, inf }
  0xfb   :  { %305 = vrsqrt.f32 %v115_v37  ;;  %vm128_vm5 = vcmp.eq.f32.partialorder %v105_v36, 0.0  ;;  %v129_v50 = vand.u32 2147483648, %v105_v36  ;;  %vm140_vm6 = vcmp.eq.f32.partialorder %v115_v37, inf }
  0xfc   :  { %v143_v57 = vand.u32 2147483648, %v115_v37  ;;  %vm142_vm7 = vcmp.eq.f32.partialorder %v115_v37, 0.0  ;;  %v152_v62 = vadd.f32 1.0, %v105_v36  ;;  %v154_v2 = vadd.f32 1.0, %v115_v37 }
 0x102   :  { %v300_v38 = vpop.eup %299 }
 0x103   :  { %v302_v40 = vpop.eup %301  ;;  %v132_v41 = vmul.f32 %v300_v38, %v247_v34 }
 0x104   :  { %v304_v43 = vpop.eup %303  ;;  %v146_v44 = vmul.f32 %v302_v40, %v250_v35 }
 0x105   :  { %v306_v47 = vpop.eup %305  ;;  %v134_v48 = vsel %vm133_vm0, %v247_v34, %v132_v41  ;;  %v125_v49 = vmul.f32 %v304_v43, %v105_v36 }
 0x106   :  { %v137_v51 = vsel %vm135_vm1, %v136_v39, %v134_v48  ;;  %v148_v52 = vsel %vm147_vm2, %v250_v35, %v146_v44  ;;  %v139_v53 = vmul.f32 %v306_v47, %v115_v37 }
 0x107   :  { %v157_v54 = vadd.f32 1e-08, %v137_v51  ;;  %v151_v55 = vsel %vm149_vm3, %v150_v45, %v148_v52  ;;  %v127_v56 = vsel %vm126_vm4, %v105_v36, %v125_v49 }
 0x108   :  { %v159_v58 = vadd.f32 1e-08, %v151_v55  ;;  %v130_v59 = vsel %vm128_vm5, %v129_v50, %v127_v56  ;;  %v141_v60 = vsel %vm140_vm6, %v115_v37, %v139_v53 }
 0x109   :  { %v161_v61 = vmul.f32 %v157_v54, %v153_v42  ;;  %v156_v63 = vadd.f32 1e-08, %v130_v59  ;;  %v144_v0 = vsel %vm142_vm7, %v143_v57, %v141_v60 }
 0x10a   :  { %v163_v1 = vmul.f32 %v159_v58, %v155_v46  ;;  %v158_v3 = vadd.f32 1e-08, %v144_v0 }
 0x10b   :  { %307 = vrcp.f32 %v161_v61  ;;  %v160_v4 = vmul.f32 %v156_v63, %v152_v62 }
 0x10c   :  { %309 = vrcp.f32 %v163_v1  ;;  %v162_v5 = vmul.f32 %v158_v3, %v154_v2 }
 0x10d   :  { %311 = vrcp.f32 %v160_v4 }
 0x10e   :  { %313 = vrcp.f32 %v162_v5 }
 0x115   :  { %v308_v6 = vpop.eup %307 }
 0x116   :  { %v310_v7 = vpop.eup %309  ;;  %v169_v8 = vmul.f32 %v308_v6, %v247_v34 }
 0x117   :  { %v312_v9 = vpop.eup %311  ;;  %v171_v10 = vmul.f32 %v310_v7, %v250_v35 }
 0x118   :  { %v314_v11 = vpop.eup %313  ;;  %v173_v12 = vmul.f32 %v392_v30, %v169_v8  ;;  %v168_v15 = vmul.f32 %v312_v9, %v105_v36 }
 0x119   :  { %v175_v16 = vmul.f32 %v394_v31, %v171_v10  ;;  %v170_v17 = vmul.f32 %v314_v11, %v115_v37 }
 0x11a   :  { %v172_v18 = vmul.f32 %v360_v13, %v168_v15  ;;  %177 = vst [vmem:[%s420_s2 + $0x8] sm:$0xff] %v173_v12 }
 0x11b   :  { %179 = vst [vmem:[%s420_s2 + $0x18] sm:$0xff] %v175_v16  ;;  %v174_v19 = vmul.f32 %v362_v14, %v170_v17 }
 0x11c   :  { %176 = vst [vmem:[%s420_s2] sm:$0xff] %v172_v18 }
 0x11d   :  { %178 = vst [vmem:[%s420_s2 + $0x10] sm:$0xff] %v174_v19 }

// kernel: primary_caps_forward.2
= control target key start
LH: loop header
LB: loop body
LE: loop exit
PB: predicated region body
PF: predicated region fallthrough
CT: control target
= control target key end

     0   :  { %s1306_s12 = smov 0   ;;  %s1429_s0 = inlined_call_operand.vmem [shape: bf16[2,4,4,65], index: 0, kind: input, shape index: {}]   ;;  %s1430_s1 = inlined_call_operand.vmem [shape: bf16[9,32,4], index: 1, kind: input, shape index: {}]   ;;  %s1431_s2 = inlined_call_operand.vmem [shape: f32[32,1], index: 2, kind: input, shape index: {}]   ;;  %s1432_s3 = inlined_call_operand.vmem [shape: bf16[2,32,56], index: 3, kind: output, shape index: {}]  }
   0x1 LB: > { %s1022_s13 = sadd.s32 4294967295, %s1279_s12   ;;  %p1026_p0 = scmp.ge.s32.totalorder %s1279_s12, 1  ;;  %s1279_s12 = sphi %s1306_s12, %s13_s12  }
   0x2   : > { %p137_p1 = scmp.lt.s32.totalorder %s1279_s12, 3 }
   0x4   : > { %p138_p2 = pnand %p1026_p0, %p137_p1 }
   0x5   : > { %p161_p3 = scmp.lt.s32.totalorder (!%p138_p2), %s1022_s13, 1  ;;  %v341_v0 = vlaneseq (!%p138_p2)  ;;  %v1255_v1 = vld [vmem:[%s1430_s1 + $0x10] sm:$0xff] (!%p138_p2)   ;;  %v1281_v2 = vmov (!%p138_p2), 1983009808   ;;  %vm194_vm0 = vcmask (!%p138_p2), 31744   ;;  %vm201_vm1 = vcmask (!%p138_p2), 1041408  }
   0x6   : > { %141 = sbr.rel (%p138_p2) target bundleno = 396 (0x18c), region = 32  ;;  %v339_v3 = vunpack.c.l.s4 (!%p138_p2), %v1281_v2  ;;  %1147 = vmatprep.mubr.msk.bf16.mxu1 (!%p138_p2), %vm194_vm0, %v1255_v1  ;;  %v1258_v7 = vld [vmem:[%s1430_s1 + $0x40] sm:$0xff] (!%p138_p2)   ;;  %v1256_v14 = vld [vmem:[%s1430_s1 + $0x18] sm:$0xff] (!%p138_p2)   ;;  %s1282_s26 = smov (!%p138_p2), 127   ;;  %v1260_v21 = vld [vmem:[%s1430_s1 + $0x48] sm:$0xff] (!%p138_p2)   ;;  %v1285_v26 = vmov (!%p138_p2), 0  }
   0x7   : > { %v342_v4 = vshrl.u32 (!%p138_p2), %v341_v0, 7  ;;  %v1257_v15 = vld [vmem:[%s1430_s1] sm:$0xff] (!%p138_p2)   ;;  %1171 = vmatprep.mubr.msk.bf16.mxu0 (!%p138_p2), %vm194_vm0, %v1258_v7  ;;  %v1262_v22 = vld [vmem:[%s1430_s1 + $0x50] sm:$0xff] (!%p138_p2)   ;;  %s1283_s4 = smov (!%p138_p2), 120   ;;  %s1284_s5 = smov (!%p138_p2), 119   ;;  %v1259_v23 = vld [vmem:[%s1430_s1 + $0x8] sm:$0xff] (!%p138_p2)   ;;  %1253 = vset.pattern.permute.xlu1 (!%p138_p2), %v1285_v26 }
   0x8   : > { %v340_v5 = vunpack.c.0.s8 (!%p138_p2), %v339_v3  ;;  %v1261_v24 = vld [vmem:[%s1430_s1 + $0x20] sm:$0xff] (!%p138_p2)   ;;  %1254 = vset.pattern.permute.xlu0 (!%p138_p2), %v1285_v26  ;;  %v919_v27 = vld [vmem:[%s1431_s2 + $0x8] sm:$0xff] (!%p138_p2)  ;;  %v920_v28 = vld [vmem:[%s1431_s2 + $0x10] sm:$0xff] (!%p138_p2)  ;;  %vm962_vm2 = vcmask (!%p138_p2), 453632  }
   0x9   : > { %v918_v25 = vld [vmem:[%s1431_s2] sm:$0xff] (!%p138_p2)  ;;  %v921_v29 = vld [vmem:[%s1431_s2 + $0x18] sm:$0xff] (!%p138_p2)  ;;  %v1263_v34 = vld [vmem:[%s1430_s1 + $0x28] sm:$0xff] (!%p138_p2)  }
   0xa   : > { %v343_v6 = vsub.s32 (!%p138_p2), %v340_v5, %v342_v4  ;;  %v1264_v35 = vld [vmem:[%s1430_s1 + $0x58] sm:$0xff] (!%p138_p2)   ;;  %v1265_v37 = vld [vmem:[%s1430_s1 + $0x30] sm:$0xff] (!%p138_p2)   ;;  %v1266_v39 = vld [vmem:[%s1430_s1 + $0x60] sm:$0xff] (!%p138_p2)  }
   0xb   : > { %v1267_v42 = vld [vmem:[%s1430_s1 + $0x38] sm:$0xff] (!%p138_p2)   ;;  %v1268_v43 = vld [vmem:[%s1430_s1 + $0x68] sm:$0xff] (!%p138_p2)   ;;  %v1269_v44 = vld [vmem:[%s1430_s1 + $0x70] sm:$0xff] (!%p138_p2)  }
   0xc   : > { %v1270_v47 = vld [vmem:[%s1430_s1 + $0x78] sm:$0xff] (!%p138_p2)   ;;  %v1271_v48 = vld [vmem:[%s1430_s1 + $0x80] sm:$0xff] (!%p138_p2)   ;;  %v1272_v50 = vld [vmem:[%s1430_s1 + $0x88] sm:$0xff] (!%p138_p2)  }
   0xd   : > { %s1434_s13 = smov (!%p161_p3, %s1022_s13), 1 }
   0xe   : > { %s1112_s16 = sshll.u32 %s1434_s13, 3  ;;  %s1113_s15 = sshll.u32 %s1434_s13, 4 }
   0xf   : > { %s165_s19 = scalar_lea.vmem %s1429_s0, %s1112_s16  ;;  %s170_s18 = scalar_lea.vmem %s1432_s3, %s1113_s15 }
  0x10   : > { %v1052_v8 = vld [vmem:[%s165_s19 + $0x4] sm:$0x3]  ;;  %v172_v9 = vld [vmem:[%s165_s19] sm:$0x3]  ;;  %v1031_v10 = vld [vmem:[%s165_s19 + $0x2] sm:$0x3] }
  0x11   : > { %v589_v11 = vrot.slane %v1052_v8, %v343_v6  ;;  %v344_v12 = vrot.slane %v172_v9, %v343_v6  ;;  %1231 = vmatprep.subr.msk.bf16.mxu1 %vm201_vm1, %v1031_v10  ;;  %v203_v13 = vsel %vm201_vm1, %v1031_v10, 0  ;;  %v1084_v16 = vld.sshfl [vmem:[%s165_s19] sm:$0x3 pattern:$0x76325410]  ;;  %v271_v19 = vsel %vm201_vm1, %v172_v9, 0 }
  0x12   : > { %v1094_v17 = vld.sshfl [vmem:[%s165_s19 + $0x2] sm:$0x3 pattern:$0x76325410]  ;;  %1146 = vmatpush3.bf16.msra.mxu1 %v203_v13  ;;  %v1061_v18 = vld [vmem:[%s165_s19 + $0x6] sm:$0x3] }
  0x13   : > { %590 = vrot.lane.b32.xlu0 %v589_v11, %s1282_s26  ;;  %345 = vrot.lane.b32.xlu1 %v344_v12, %s1282_s26  ;;  %v512_v20 = vsel %vm201_vm1, %v1061_v18, 0  ;;  %v433_v36 = vsel %vm201_vm1, %v1052_v8, 0 }
  0x14   : > { %1232 = vmatprep.subr.msk.bf16.mxu1 %vm201_vm1, %v172_v9  ;;  %1235 = vmatprep.subr.msk.bf16.mxu0 %vm201_vm1, %v1061_v18 }
  0x15   : > { %1148 = vmatmul.mubr.msk.bf16.vlgmr.msra.gmra.mrb[0].mxu1 %vm194_vm0, %v1256_v14  ;;  %1170 = vmatpush3.bf16.msra.mxu0 %v512_v20 }
  0x16   : > { %1152 = vmatpush3.bf16.msra.mxu1 %v271_v19  ;;  %1153 = vmatprep.mubr.msk.bf16.mxu1 %vm194_vm0, %v1257_v15 }
  0x17   : > { %678 = vrot.lane.b32.xlu0 %v1084_v16, %s1283_s4  ;;  %766 = vrot.lane.b32.xlu1 %v1094_v17, %s1283_s4 }
  0x18   : > { %1172 = vmatmul.mubr.msk.bf16.vlgmr.msra.gmra.mrb[0].mxu0 %vm194_vm0, %v1260_v21 }
  0x19   : > { %1177 = vmatprep.mubr.msk.bf16.mxu0 %vm194_vm0, %v1262_v22 }
  0x1b   : > { %854 = vrot.lane.b32.xlu0 %v1084_v16, %s1284_s5  ;;  %924 = vperm.xlu1 %1253, %v918_v25  }
  0x1f   : > { %929 = vperm.xlu0 %1254, %v919_v27   ;;  %934 = vperm.xlu1 %1253, %v920_v28  }
  0x21   : > { %1154 = vmatmul.mubr.msk.bf16.vlgmr.msra.gmra.mrb[0].mxu1 %vm194_vm0, %v1259_v23 }
  0x22   : > { %1159 = vmatprep.mubr.msk.bf16.mxu1 %vm194_vm0, %v1261_v24 }
  0x23   : > { %939 = vperm.xlu1 %1253, %v921_v29  }
  0x85   : > { %v591_v30 = vpop.permute.xlu0 %590  ;;  %v346_v31 = vpop.permute.xlu1 %345 }
  0x86   : > { %v599_v32 = vsel %vm201_vm1, %v591_v30, 0  ;;  %v354_v33 = vsel %vm201_vm1, %v346_v31, 0  ;;  %1233 = vmatprep.subr.msk.bf16.mxu1 %vm201_vm1, %v346_v31  ;;  %1236 = vmatprep.subr.msk.bf16.mxu0 %vm201_vm1, %v591_v30 }
  0x87   : > { %1158 = vmatpush3.bf16.msra.mxu1 %v354_v33  ;;  %1176 = vmatpush3.bf16.msra.mxu0 %v599_v32 }
  0x88   : > { %1234 = vmatprep.subr.msk.bf16.mxu1 %vm201_vm1, %v1052_v8 }
  0x89   : > { %v679_v38 = vpop.permute.xlu0 %678  ;;  %v767_v41 = vpop.permute.xlu1 %766 }
  0x8a   : > { %1160 = vmatmul.mubr.msk.bf16.vlgmr.msra.gmra.mrb[0].mxu1 %vm194_vm0, %v1263_v34  ;;  %1178 = vmatmul.mubr.msk.bf16.vlgmr.msra.gmra.mrb[0].mxu0 %vm194_vm0, %v1264_v35  ;;  %v687_v40 = vsel %vm201_vm1, %v679_v38, 0  ;;  %v775_v45 = vsel %vm201_vm1, %v767_v41, 0 }
  0x8b   : > { %1237 = vmatprep.subr.msk.bf16.mxu0 %vm201_vm1, %v679_v38  ;;  %1164 = vmatpush3.bf16.msra.mxu1 %v433_v36 }
  0x8c   : > { %1182 = vmatpush3.bf16.msra.mxu0 %v687_v40  ;;  %1165 = vmatprep.mubr.msk.bf16.mxu1 %vm194_vm0, %v1265_v37 }
  0x8d   : > { %1183 = vmatprep.mubr.msk.bf16.mxu0 %vm194_vm0, %v1266_v39  ;;  %1238 = vmatprep.subr.msk.bf16.mxu0 %vm201_vm1, %v767_v41  ;;  %v855_v46 = vpop.permute.xlu0 %854 }
  0x8e   : > { %v863_v49 = vsel %vm201_vm1, %v855_v46, 0 }
  0x96   : > { %1166 = vmatmul.mubr.msk.bf16.vlgmr.msra.gmra.mrb[0].mxu1 %vm194_vm0, %v1267_v42  ;;  %1184 = vmatmul.mubr.msk.bf16.vlgmr.msra.gmra.mrb[0].mxu0 %vm194_vm0, %v1268_v43 }
  0x97   : > { %1188 = vmatpush3.bf16.msra.mxu0 %v775_v45  ;;  %1189 = vmatprep.mubr.msk.bf16.mxu0 %vm194_vm0, %v1269_v44 }
  0x98   : > { %1239 = vmatprep.subr.msk.bf16.mxu0 %vm201_vm1, %v855_v46 }
  0x9a   : > { %v925_v55 = vpop.permute.xlu1 %924 }
  0x9e   : > { %v935_v56 = vpop.permute.xlu1 %934  ;;  %v930_v1 = vpop.permute.xlu0 %929 }
  0xa2   : > { %1190 = vmatmul.mubr.msk.bf16.vlgmr.msra.gmra.mrb[0].mxu0 %vm194_vm0, %v1270_v47  ;;  %v940_v4 = vpop.permute.xlu1 %939 }
  0xa3   : > { %1194 = vmatpush3.bf16.msra.mxu0 %v863_v49  ;;  %1195 = vmatprep.mubr.msk.bf16.mxu0 %vm194_vm0, %v1271_v48 }
  0xae   : > { %1196 = vmatmul.mubr.msk.bf16.vlgmr.msra.gmra.mrb[0].mxu0 %vm194_vm0, %v1272_v50 }
 0x169   : > { %v1167_v51 = vpop.f32.mrb[0].mxu1 }
 0x16a   : > { %v469_v52 = vpop.f32.mrb[1].mxu1 }
 0x16b   : > { %v1168_v53 = vpop.f32.mrb[2].mxu1 }
 0x16c   : > { %v472_v54 = vpop.f32.mrb[3].mxu1 }
 0x181   : > { %v1197_v57 = vpop.f32.mrb[0].mxu0 }
 0x182   : > { %v1199_v58 = vadd.f32 %v1197_v57, %v1167_v51  ;;  %v899_v59 = vpop.f32.mrb[1].mxu0 }
 0x183   : > { %v1200_v60 = vadd.f32 %v899_v59, %v469_v52  ;;  %v1198_v61 = vpop.f32.mrb[2].mxu0 }
 0x184   : > { %v944_v62 = vadd.f32 %v1199_v58, %v935_v56  ;;  %v1201_v63 = vadd.f32 %v1198_v61, %v1168_v53  ;;  %v902_v0 = vpop.f32.mrb[3].mxu0 }
 0x185   : > { %v942_v2 = vadd.f32 %v1200_v60, %v925_v55  ;;  %v1202_v3 = vadd.f32 %v902_v0, %v472_v54 }
 0x186   : > { %v1116_v5 = vpack.c.bf16 %v944_v62, %v944_v62  ;;  %v945_v6 = vadd.f32 %v1201_v63, %v940_v4 }
 0x187   : > { %v1114_v7 = vpack.c.bf16 %v942_v2, %v942_v2  ;;  %v943_v8 = vadd.f32 %v1202_v3, %v930_v1 }
 0x188   : > { %965 = vst.msk [vmem:[%s170_s18 + $0x8] sm:$0xf] %vm962_vm2, %v1116_v5  ;;  %v1117_v9 = vpack.c.bf16 %v945_v6, %v945_v6 }
 0x189   : > { %963 = vst.msk [vmem:[%s170_s18] sm:$0xf] %vm962_vm2, %v1114_v7  ;;  %v1115_v10 = vpack.c.bf16 %v943_v8, %v943_v8 }
 0x18a   : > { %966 = vst.msk [vmem:[%s170_s18 + $0xc] sm:$0xf] %vm962_vm2, %v1117_v9 }
 0x18b   : > { %964 = vst.msk [vmem:[%s170_s18 + $0x4] sm:$0xf] %vm962_vm2, %v1115_v10 }
 0x18c PF: > { %s13_s12 = sadd.s32 1, %s1279_s12  }
 0x18d   : > { %p10_p4 = scmp.ge.s32.totalorder %s13_s12, 4  }
 0x18f   :  { %12 = sbr.rel (!%p10_p4) target bundleno = 1 (0x1), region = 73 }

</bundles_post_ra>
